<compile_context>
chip_gen: v7x
topology: tpu7x:2x2x1
jax: 0.10.0
libtpu: 0.0.40
codegen_flags: <defaults>
</compile_context>

<pallas_src>
import functools

import jax
import jax.numpy as jnp
import numpy as np
from jax.experimental import pallas as pl
from jax.experimental.pallas import tpu as pltpu

NEG_SLOPE = 0.01   # F.leaky_relu default
EPS = 1e-5         # nn.LayerNorm default


def _leaky_relu(v):
    return jnp.where(v >= 0, v, NEG_SLOPE * v)


def _layernorm(v, gamma, beta):
    # v: (tl, N) f32 -- normalize over last dim (PyTorch LayerNorm, biased var)
    mean = jnp.mean(v, axis=-1, keepdims=True)
    var = jnp.mean((v - mean) ** 2, axis=-1, keepdims=True)
    return (v - mean) * jax.lax.rsqrt(var + EPS) * gamma + beta


def dilated_resblock_kernel(dilation,
                            x_ref,      # (1, tl, C)          input tile (f32)
                            wr_ref,     # (C, half)            reduce weight (in, out)
                            br_ref,     # (1, half)            reduce bias (f32)
                            wms_ref,    # (3*half, half)       stacked masked weight
                            bm_ref,     # (1, half)            masked bias (f32)
                            wi_ref,     # (half, C)            increase weight (in, out)
                            bi_ref,     # (1, C)               increase bias (f32)
                            gmn_ref,    # (1, half)            masked_norm gamma
                            bmn_ref,    # (1, half)            masked_norm beta
                            gin_ref,    # (1, half)            increase_norm gamma
                            binc_ref,   # (1, half)            increase_norm beta
                            o_ref,      # (1, tl, C)
                            ybuf_ref):  # (tl + 2*dilation, half) persistent carry buffer
    l = pl.program_id(1)
    pad = 2 * dilation
    cdt = wr_ref.dtype                       # matmul compute dtype (bf16 or f32)

    x = x_ref[0]                             # (tl, C) f32
    tl = x.shape[0]
    half = wr_ref.shape[1]

    # ---- reduce: leaky -> 1x1 conv -> LayerNorm(half) -> leaky -------------
    y = _leaky_relu(x)
    y = jnp.dot(y.astype(cdt), wr_ref[...],
                preferred_element_type=jnp.float32) + br_ref[...]     # (tl, half)
    y = _leaky_relu(_layernorm(y, gmn_ref[...], bmn_ref[...]))
    y_c = y.astype(cdt)

    # ---- causal halo: first tile starts from zeros (== F.pad of y) ---------
    @pl.when(l == 0)
    def _():
        ybuf_ref[pl.ds(0, pad), :] = jnp.zeros((pad, half), ybuf_ref.dtype)

    # rows [pad, pad+tl) of ybuf hold this tile's y; rows [0, pad) hold the
    # previous tile's last `pad` rows (the carry).
    ybuf_ref[pl.ds(pad, tl), :] = y_c

    # ---- dilated causal conv (kernel 3) -------------------------------------
    if half % 128 == 0:
        # Fused: one wide-K MXU matmul with the taps stacked along K.
        taps = jnp.concatenate(
            [ybuf_ref[pl.ds(0, tl), :],
             ybuf_ref[pl.ds(dilation, tl), :],
             y_c],                                  # tap k=2 == current y
            axis=-1)                                               # (tl, 3*half)
        z = jnp.dot(taps, wms_ref[...], preferred_element_type=jnp.float32)
    else:
        # Unaligned (toy) channel count: 3 small dots, same stacked weight.
        z = jnp.dot(ybuf_ref[pl.ds(0, tl), :], wms_ref[pl.ds(0, half), :],
                    preferred_element_type=jnp.float32)
        z = z + jnp.dot(ybuf_ref[pl.ds(dilation, tl), :],
                        wms_ref[pl.ds(half, half), :],
                        preferred_element_type=jnp.float32)
        z = z + jnp.dot(y_c, wms_ref[pl.ds(2 * half, half), :],
                        preferred_element_type=jnp.float32)
    z = z + bm_ref[...]                                            # (tl, half)

    # ---- increase: LayerNorm(half) -> leaky -> 1x1 conv ---------------------
    z = _leaky_relu(_layernorm(z, gin_ref[...], binc_ref[...]))
    z = jnp.dot(z.astype(cdt), wi_ref[...],
                preferred_element_type=jnp.float32) + bi_ref[...]  # (tl, C)

    # ---- residual -----------------------------------------------------------
    o_ref[0] = (x + z).astype(o_ref.dtype)

    # ---- carry the last `pad` rows of y for the next L tile -----------------
    ybuf_ref[pl.ds(0, pad), :] = ybuf_ref[pl.ds(tl, pad), :]


def _full_spec(shape):
    nd = len(shape)
    return pl.BlockSpec(shape, lambda b, l, _nd=nd: (0,) * _nd)


@functools.partial(jax.jit, static_argnames=("dilation", "l_tile", "compute_dtype"))
def dilated_resblock(x, params, dilation, l_tile=512, compute_dtype=jnp.bfloat16):
    """x: (B, C, L) NCL like PyTorch; returns (B, C, L)."""
    B, C, L = x.shape
    half = C // 2
    pad = 2 * dilation

    # L tile: sublane-aligned (multiple of 8) unless it covers the whole L.
    tl = min(l_tile, L)
    if tl < L and tl % 8 != 0:
        tl = max(8, (tl // 8) * 8)
    n_l = -(-L // tl)
    Lp = n_l * tl

    x_lc = jnp.transpose(x, (0, 2, 1))                    # (B, L, C)
    if Lp != L:
        # Zero-pad the tail; conv is causal so padded rows never affect
        # real outputs (they are sliced off below).
        x_lc = jnp.pad(x_lc, ((0, 0), (0, Lp - L), (0, 0)))

    cdt = compute_dtype
    # Pre-transposed / pre-stacked weights (no in-kernel .T).
    wr = jnp.transpose(params['reduce_w'][..., 0]).astype(cdt)            # (C, half)
    br = params['reduce_b'].reshape(1, half).astype(jnp.float32)
    # masked_w: (out, in, k) -> (k, in, out) -> (3*half_in, half_out)
    wms = jnp.transpose(params['masked_w'], (2, 1, 0)).reshape(3 * half, half).astype(cdt)
    bm = params['masked_b'].reshape(1, half).astype(jnp.float32)
    wi = jnp.transpose(params['increase_w'][..., 0]).astype(cdt)          # (half, C)
    bi = params['increase_b'].reshape(1, C).astype(jnp.float32)
    gmn = params['masked_norm_w'].reshape(1, half).astype(jnp.float32)
    bmn = params['masked_norm_b'].reshape(1, half).astype(jnp.float32)
    gin = params['increase_norm_w'].reshape(1, half).astype(jnp.float32)
    binc = params['increase_norm_b'].reshape(1, half).astype(jnp.float32)

    out_lc = pl.pallas_call(
        functools.partial(dilated_resblock_kernel, dilation),
        out_shape=jax.ShapeDtypeStruct((B, Lp, C), x.dtype),
        grid=(B, n_l),
        in_specs=[
            pl.BlockSpec((1, tl, C), lambda b, l: (b, l, 0)),
            _full_spec(wr.shape), _full_spec(br.shape),
            _full_spec(wms.shape), _full_spec(bm.shape),
            _full_spec(wi.shape), _full_spec(bi.shape),
            _full_spec(gmn.shape), _full_spec(bmn.shape),
            _full_spec(gin.shape), _full_spec(binc.shape),
        ],
        out_specs=pl.BlockSpec((1, tl, C), lambda b, l: (b, l, 0)),
        scratch_shapes=[pltpu.VMEM((tl + pad, half), cdt)],
        input_output_aliases={0: 0},                       # donate x_lc -> out
        compiler_params=pltpu.CompilerParams(
            dimension_semantics=("parallel", "arbitrary"),  # batch across cores,
            vmem_limit_bytes=48 * 1024 * 1024),             # L sweep sequential
    )(x_lc, wr, br, wms, bm, wi, bi, gmn, bmn, gin, binc)

    if Lp != L:
        out_lc = out_lc[:, :L, :]
    return jnp.transpose(out_lc, (0, 2, 1))               # back to (B, C, L)


def reference(x, p, dilation):
    """Pure-JAX reference mirroring the PyTorch forward (NCL layout)."""
    B, C, L = x.shape
    half = C // 2

    def ln(v, g, b):
        m = v.mean(-1, keepdims=True)
        var = ((v - m) ** 2).mean(-1, keepdims=True)
        return (v - m) / jnp.sqrt(var + EPS) * g + b

    y = _leaky_relu(x)
    y = jnp.einsum('bcl,oc->bol', y, p['reduce_w'][..., 0]) + p['reduce_b'][None, :, None]
    y = jnp.transpose(ln(jnp.transpose(y, (0, 2, 1)),
                         p['masked_norm_w'], p['masked_norm_b']), (0, 2, 1))
    y = _leaky_relu(y)
    pad = 2 * dilation
    ypad = jnp.pad(y, ((0, 0), (0, 0), (pad, 0)))
    conv = jnp.zeros((B, half, L), x.dtype) + p['masked_b'][None, :, None]
    for k in range(3):
        tap = ypad[:, :, k * dilation: k * dilation + L]
        conv = conv + jnp.einsum('bil,oi->bol', tap, p['masked_w'][:, :, k])
    y = conv
    y = jnp.transpose(ln(jnp.transpose(y, (0, 2, 1)),
                         p['increase_norm_w'], p['increase_norm_b']), (0, 2, 1))
    y = _leaky_relu(y)
    y = jnp.einsum('bhl,oh->bol', y, p['increase_w'][..., 0]) + p['increase_b'][None, :, None]
    return x + y


def make_params(key, C):
    half = C // 2
    ks = jax.random.split(key, 10)
    return {
        'reduce_w':        jax.random.normal(ks[0], (half, C, 1), jnp.float32) / np.sqrt(C),
        'reduce_b':        0.1 * jax.random.normal(ks[1], (half,), jnp.float32),
        'masked_w':        jax.random.normal(ks[2], (half, half, 3), jnp.float32) / np.sqrt(3 * half),
        'masked_b':        0.1 * jax.random.normal(ks[3], (half,), jnp.float32),
        'increase_w':      jax.random.normal(ks[4], (C, half, 1), jnp.float32) / np.sqrt(half),
        'increase_b':      0.1 * jax.random.normal(ks[5], (C,), jnp.float32),
        'masked_norm_w':   1.0 + 0.1 * jax.random.normal(ks[6], (half,), jnp.float32),
        'masked_norm_b':   0.1 * jax.random.normal(ks[7], (half,), jnp.float32),
        'increase_norm_w': 1.0 + 0.1 * jax.random.normal(ks[8], (half,), jnp.float32),
        'increase_norm_b': 0.1 * jax.random.normal(ks[9], (half,), jnp.float32),
    }


if __name__ == "__main__":
    key = jax.random.PRNGKey(0)

    # --- Test 1: small module shapes, f32 compute, two L tiles (carry) ------
    B, C, L, d = 2, 4, 16, 2
    kx, kp = jax.random.split(key)
    x = jax.random.normal(kx, (B, C, L), jnp.float32)
    p = make_params(kp, C)
    out = jax.block_until_ready(
        dilated_resblock(x, p, dilation=d, l_tile=8, compute_dtype=jnp.float32))
    ref = jax.block_until_ready(reference(x, p, d))
    np.testing.assert_allclose(np.asarray(out), np.asarray(ref), atol=1e-4, rtol=1e-4)

    # --- Test 2: lane-aligned shapes (half=128), 4 L tiles, f32 compute -----
    B2, C2, L2, d2 = 2, 256, 512, 4
    kx2, kp2 = jax.random.split(jax.random.PRNGKey(1))
    x2 = jax.random.normal(kx2, (B2, C2, L2), jnp.float32)
    p2 = make_params(kp2, C2)
    out2 = jax.block_until_ready(
        dilated_resblock(x2, p2, dilation=d2, l_tile=128, compute_dtype=jnp.float32))
    ref2 = jax.block_until_ready(reference(x2, p2, d2))
    np.testing.assert_allclose(np.asarray(out2), np.asarray(ref2), atol=2e-3, rtol=2e-3)

    # --- Test 3: same shapes, bf16 matmuls with f32 accumulation ------------
    out3 = jax.block_until_ready(
        dilated_resblock(x2, p2, dilation=d2, l_tile=128, compute_dtype=jnp.bfloat16))
    np.testing.assert_allclose(np.asarray(out3), np.asarray(ref2), atol=1e-1, rtol=1e-1)

    print("KERNEL_OK")
</pallas_src>

<mosaic_0001>
module attributes {stable_mosaic.version = 11 : i64} {
  func.func @dilated_resblock_kernel(%arg0: i32, %arg1: i32, %arg2: memref<1x8x4xf32, #tpu.memory_space<vmem>>, %arg3: memref<4x2xf32, #tpu.memory_space<vmem>>, %arg4: memref<1x2xf32, #tpu.memory_space<vmem>>, %arg5: memref<6x2xf32, #tpu.memory_space<vmem>>, %arg6: memref<1x2xf32, #tpu.memory_space<vmem>>, %arg7: memref<2x4xf32, #tpu.memory_space<vmem>>, %arg8: memref<1x4xf32, #tpu.memory_space<vmem>>, %arg9: memref<1x2xf32, #tpu.memory_space<vmem>>, %arg10: memref<1x2xf32, #tpu.memory_space<vmem>>, %arg11: memref<1x2xf32, #tpu.memory_space<vmem>>, %arg12: memref<1x2xf32, #tpu.memory_space<vmem>>, %arg13: memref<1x8x4xf32, #tpu.memory_space<vmem>>, %arg14: memref<12x2xf32, #tpu.memory_space<vmem>>) attributes {dimension_semantics = [#tpu.dimension_semantics<parallel>, #tpu.dimension_semantics<arbitrary>], iteration_bounds = array<i64: 2, 2>, scalar_prefetch = 0 : i64, scratch_operands = 1 : i64, tpu.core_type = #tpu.core_type<tc>, window_params = [{transform_indices = @transform_0, window_bounds = array<i64: 1, 8, 4>}, {pipeline_mode = #tpu.pipeline_mode<synchronous>, transform_indices = @transform_1, window_bounds = array<i64: 4, 2>}, {pipeline_mode = #tpu.pipeline_mode<synchronous>, transform_indices = @transform_2, window_bounds = array<i64: 1, 2>}, {pipeline_mode = #tpu.pipeline_mode<synchronous>, transform_indices = @transform_3, window_bounds = array<i64: 6, 2>}, {pipeline_mode = #tpu.pipeline_mode<synchronous>, transform_indices = @transform_4, window_bounds = array<i64: 1, 2>}, {pipeline_mode = #tpu.pipeline_mode<synchronous>, transform_indices = @transform_5, window_bounds = array<i64: 2, 4>}, {pipeline_mode = #tpu.pipeline_mode<synchronous>, transform_indices = @transform_6, window_bounds = array<i64: 1, 4>}, {pipeline_mode = #tpu.pipeline_mode<synchronous>, transform_indices = @transform_7, window_bounds = array<i64: 1, 2>}, {pipeline_mode = #tpu.pipeline_mode<synchronous>, transform_indices = @transform_8, window_bounds = array<i64: 1, 2>}, {pipeline_mode = #tpu.pipeline_mode<synchronous>, transform_indices = @transform_9, window_bounds = array<i64: 1, 2>}, {pipeline_mode = #tpu.pipeline_mode<synchronous>, transform_indices = @transform_10, window_bounds = array<i64: 1, 2>}, {transform_indices = @transform_11, window_bounds = array<i64: 1, 8, 4>}]} {
    %c0 = arith.constant 0 : index
    %c0_0 = arith.constant 0 : index
    %c0_1 = arith.constant 0 : index
    %0 = vector.load %arg2[%c0, %c0_0, %c0_1] : memref<1x8x4xf32, #tpu.memory_space<vmem>>, vector<1x8x4xf32>
    %1 = vector.shape_cast %0 : vector<1x8x4xf32> to vector<8x4xf32>
    %cst = arith.constant 0.000000e+00 : f32
    %2 = vector.broadcast %cst : f32 to vector<8x4xf32>
    %3 = arith.cmpf oge, %1, %2 : vector<8x4xf32>
    %cst_2 = arith.constant 0.00999999977 : f32
    %4 = vector.broadcast %cst_2 : f32 to vector<8x4xf32>
    %5 = arith.mulf %4, %1 : vector<8x4xf32>
    %6 = arith.select %3, %1, %5 : vector<8x4xi1>, vector<8x4xf32>
    %c0_3 = arith.constant 0 : index
    %c0_4 = arith.constant 0 : index
    %7 = vector.load %arg3[%c0_3, %c0_4] : memref<4x2xf32, #tpu.memory_space<vmem>>, vector<4x2xf32>
    %cst_5 = arith.constant dense<0.000000e+00> : vector<8x2xf32>
    %8 = tpu.matmul %6, %7, %cst_5 {dimension_numbers = #tpu.dot_dimension_numbers<[1], [0], [0], [1], [0, 0, 1, 1], [], []>} : vector<8x4xf32>, vector<4x2xf32>, vector<8x2xf32> -> vector<8x2xf32>
    %c0_6 = arith.constant 0 : index
    %c0_7 = arith.constant 0 : index
    %9 = vector.load %arg4[%c0_6, %c0_7] : memref<1x2xf32, #tpu.memory_space<vmem>>, vector<1x2xf32>
    %10 = vector.broadcast %9 : vector<1x2xf32> to vector<8x2xf32>
    %11 = arith.addf %8, %10 : vector<8x2xf32>
    %c0_8 = arith.constant 0 : index
    %c0_9 = arith.constant 0 : index
    %12 = vector.load %arg9[%c0_8, %c0_9] : memref<1x2xf32, #tpu.memory_space<vmem>>, vector<1x2xf32>
    %c0_10 = arith.constant 0 : index
    %c0_11 = arith.constant 0 : index
    %13 = vector.load %arg10[%c0_10, %c0_11] : memref<1x2xf32, #tpu.memory_space<vmem>>, vector<1x2xf32>
    %cst_12 = arith.constant dense<0.000000e+00> : vector<8xf32>
    %14 = vector.multi_reduction <add>, %11, %cst_12 [1] : vector<8x2xf32> to vector<8xf32>
    %15 = vector.shape_cast %14 : vector<8xf32> to vector<8x1xf32>
    %cst_13 = arith.constant 2.000000e+00 : f32
    %16 = vector.broadcast %cst_13 : f32 to vector<8x1xf32>
    %17 = arith.divf %15, %16 : vector<8x1xf32>
    %18 = vector.broadcast %17 : vector<8x1xf32> to vector<8x2xf32>
    %19 = arith.subf %11, %18 : vector<8x2xf32>
    %20 = arith.mulf %19, %19 : vector<8x2xf32>
    %cst_14 = arith.constant dense<0.000000e+00> : vector<8xf32>
    %21 = vector.multi_reduction <add>, %20, %cst_14 [1] : vector<8x2xf32> to vector<8xf32>
    %22 = vector.shape_cast %21 : vector<8xf32> to vector<8x1xf32>
    %cst_15 = arith.constant 2.000000e+00 : f32
    %23 = vector.broadcast %cst_15 : f32 to vector<8x1xf32>
    %24 = arith.divf %22, %23 : vector<8x1xf32>
    %25 = vector.broadcast %17 : vector<8x1xf32> to vector<8x2xf32>
    %26 = arith.subf %11, %25 : vector<8x2xf32>
    %cst_16 = arith.constant 9.99999974E-6 : f32
    %27 = vector.broadcast %cst_16 : f32 to vector<8x1xf32>
    %28 = arith.addf %24, %27 : vector<8x1xf32>
    %29 = math.rsqrt %28 : vector<8x1xf32>
    %30 = vector.broadcast %29 : vector<8x1xf32> to vector<8x2xf32>
    %31 = arith.mulf %26, %30 : vector<8x2xf32>
    %32 = vector.broadcast %12 : vector<1x2xf32> to vector<8x2xf32>
    %33 = arith.mulf %31, %32 : vector<8x2xf32>
    %34 = vector.broadcast %13 : vector<1x2xf32> to vector<8x2xf32>
    %35 = arith.addf %33, %34 : vector<8x2xf32>
    %cst_17 = arith.constant 0.000000e+00 : f32
    %36 = vector.broadcast %cst_17 : f32 to vector<8x2xf32>
    %37 = arith.cmpf oge, %35, %36 : vector<8x2xf32>
    %cst_18 = arith.constant 0.00999999977 : f32
    %38 = vector.broadcast %cst_18 : f32 to vector<8x2xf32>
    %39 = arith.mulf %38, %35 : vector<8x2xf32>
    %40 = arith.select %37, %35, %39 : vector<8x2xi1>, vector<8x2xf32>
    %c0_i32 = arith.constant 0 : i32
    %41 = arith.cmpi eq, %arg1, %c0_i32 : i32
    %42 = arith.extui %41 : i1 to i32
    %c0_i32_19 = arith.constant 0 : i32
    %43 = arith.cmpi ne, %42, %c0_i32_19 : i32
    scf.if %43 {
      %cst_57 = arith.constant 0.000000e+00 : f32
      %98 = vector.broadcast %cst_57 : f32 to vector<4x2xf32>
      %c0_58 = arith.constant 0 : index
      %c0_59 = arith.constant 0 : index
      %99 = vector.load %arg14[%c0_58, %c0_59] : memref<12x2xf32, #tpu.memory_space<vmem>>, vector<4x2xf32>
      tpu.vector_store %arg14[%c0_58, %c0_59], %98 {strides = array<i32>} : memref<12x2xf32, #tpu.memory_space<vmem>>, vector<4x2xf32>,
    } else {
    }
    %c4 = arith.constant 4 : index
    %c0_20 = arith.constant 0 : index
    %44 = vector.load %arg14[%c4, %c0_20] : memref<12x2xf32, #tpu.memory_space<vmem>>, vector<8x2xf32>
    tpu.vector_store %arg14[%c4, %c0_20], %40 {strides = array<i32>} : memref<12x2xf32, #tpu.memory_space<vmem>>, vector<8x2xf32>,
    %c0_21 = arith.constant 0 : index
    %c0_22 = arith.constant 0 : index
    %45 = vector.load %arg14[%c0_21, %c0_22] : memref<12x2xf32, #tpu.memory_space<vmem>>, vector<8x2xf32>
    %c0_23 = arith.constant 0 : index
    %c0_24 = arith.constant 0 : index
    %46 = vector.load %arg5[%c0_23, %c0_24] : memref<6x2xf32, #tpu.memory_space<vmem>>, vector<2x2xf32>
    %cst_25 = arith.constant dense<0.000000e+00> : vector<8x2xf32>
    %47 = tpu.matmul %45, %46, %cst_25 {dimension_numbers = #tpu.dot_dimension_numbers<[1], [0], [0], [1], [0, 0, 1, 1], [], []>} : vector<8x2xf32>, vector<2x2xf32>, vector<8x2xf32> -> vector<8x2xf32>
    %c2 = arith.constant 2 : index
    %c0_26 = arith.constant 0 : index
    %48 = vector.load %arg14[%c2, %c0_26] : memref<12x2xf32, #tpu.memory_space<vmem>>, vector<8x2xf32>
    %c2_27 = arith.constant 2 : index
    %c0_28 = arith.constant 0 : index
    %49 = vector.load %arg5[%c2_27, %c0_28] : memref<6x2xf32, #tpu.memory_space<vmem>>, vector<2x2xf32>
    %cst_29 = arith.constant dense<0.000000e+00> : vector<8x2xf32>
    %50 = tpu.matmul %48, %49, %cst_29 {dimension_numbers = #tpu.dot_dimension_numbers<[1], [0], [0], [1], [0, 0, 1, 1], [], []>} : vector<8x2xf32>, vector<2x2xf32>, vector<8x2xf32> -> vector<8x2xf32>
    %51 = arith.addf %47, %50 : vector<8x2xf32>
    %c4_30 = arith.constant 4 : index
    %c0_31 = arith.constant 0 : index
    %52 = vector.load %arg5[%c4_30, %c0_31] : memref<6x2xf32, #tpu.memory_space<vmem>>, vector<2x2xf32>
    %cst_32 = arith.constant dense<0.000000e+00> : vector<8x2xf32>
    %53 = tpu.matmul %40, %52, %cst_32 {dimension_numbers = #tpu.dot_dimension_numbers<[1], [0], [0], [1], [0, 0, 1, 1], [], []>} : vector<8x2xf32>, vector<2x2xf32>, vector<8x2xf32> -> vector<8x2xf32>
    %54 = arith.addf %51, %53 : vector<8x2xf32>
    %c0_33 = arith.constant 0 : index
    %c0_34 = arith.constant 0 : index
    %55 = vector.load %arg6[%c0_33, %c0_34] : memref<1x2xf32, #tpu.memory_space<vmem>>, vector<1x2xf32>
    %56 = vector.broadcast %55 : vector<1x2xf32> to vector<8x2xf32>
    %57 = arith.addf %54, %56 : vector<8x2xf32>
    %c0_35 = arith.constant 0 : index
    %c0_36 = arith.constant 0 : index
    %58 = vector.load %arg11[%c0_35, %c0_36] : memref<1x2xf32, #tpu.memory_space<vmem>>, vector<1x2xf32>
    %c0_37 = arith.constant 0 : index
    %c0_38 = arith.constant 0 : index
    %59 = vector.load %arg12[%c0_37, %c0_38] : memref<1x2xf32, #tpu.memory_space<vmem>>, vector<1x2xf32>
    %cst_39 = arith.constant dense<0.000000e+00> : vector<8xf32>
    %60 = vector.multi_reduction <add>, %57, %cst_39 [1] : vector<8x2xf32> to vector<8xf32>
    %61 = vector.shape_cast %60 : vector<8xf32> to vector<8x1xf32>
    %cst_40 = arith.constant 2.000000e+00 : f32
    %62 = vector.broadcast %cst_40 : f32 to vector<8x1xf32>
    %63 = arith.divf %61, %62 : vector<8x1xf32>
    %64 = vector.broadcast %63 : vector<8x1xf32> to vector<8x2xf32>
    %65 = arith.subf %57, %64 : vector<8x2xf32>
    %66 = arith.mulf %65, %65 : vector<8x2xf32>
    %cst_41 = arith.constant dense<0.000000e+00> : vector<8xf32>
    %67 = vector.multi_reduction <add>, %66, %cst_41 [1] : vector<8x2xf32> to vector<8xf32>
    %68 = vector.shape_cast %67 : vector<8xf32> to vector<8x1xf32>
    %cst_42 = arith.constant 2.000000e+00 : f32
    %69 = vector.broadcast %cst_42 : f32 to vector<8x1xf32>
    %70 = arith.divf %68, %69 : vector<8x1xf32>
    %71 = vector.broadcast %63 : vector<8x1xf32> to vector<8x2xf32>
    %72 = arith.subf %57, %71 : vector<8x2xf32>
    %cst_43 = arith.constant 9.99999974E-6 : f32
    %73 = vector.broadcast %cst_43 : f32 to vector<8x1xf32>
    %74 = arith.addf %70, %73 : vector<8x1xf32>
    %75 = math.rsqrt %74 : vector<8x1xf32>
    %76 = vector.broadcast %75 : vector<8x1xf32> to vector<8x2xf32>
    %77 = arith.mulf %72, %76 : vector<8x2xf32>
    %78 = vector.broadcast %58 : vector<1x2xf32> to vector<8x2xf32>
    %79 = arith.mulf %77, %78 : vector<8x2xf32>
    %80 = vector.broadcast %59 : vector<1x2xf32> to vector<8x2xf32>
    %81 = arith.addf %79, %80 : vector<8x2xf32>
    %cst_44 = arith.constant 0.000000e+00 : f32
    %82 = vector.broadcast %cst_44 : f32 to vector<8x2xf32>
    %83 = arith.cmpf oge, %81, %82 : vector<8x2xf32>
    %cst_45 = arith.constant 0.00999999977 : f32
    %84 = vector.broadcast %cst_45 : f32 to vector<8x2xf32>
    %85 = arith.mulf %84, %81 : vector<8x2xf32>
    %86 = arith.select %83, %81, %85 : vector<8x2xi1>, vector<8x2xf32>
    %c0_46 = arith.constant 0 : index
    %c0_47 = arith.constant 0 : index
    %87 = vector.load %arg7[%c0_46, %c0_47] : memref<2x4xf32, #tpu.memory_space<vmem>>, vector<2x4xf32>
    %cst_48 = arith.constant dense<0.000000e+00> : vector<8x4xf32>
    %88 = tpu.matmul %86, %87, %cst_48 {dimension_numbers = #tpu.dot_dimension_numbers<[1], [0], [0], [1], [0, 0, 1, 1], [], []>} : vector<8x2xf32>, vector<2x4xf32>, vector<8x4xf32> -> vector<8x4xf32>
    %c0_49 = arith.constant 0 : index
    %c0_50 = arith.constant 0 : index
    %89 = vector.load %arg8[%c0_49, %c0_50] : memref<1x4xf32, #tpu.memory_space<vmem>>, vector<1x4xf32>
    %90 = vector.broadcast %89 : vector<1x4xf32> to vector<8x4xf32>
    %91 = arith.addf %88, %90 : vector<8x4xf32>
    %92 = arith.addf %1, %91 : vector<8x4xf32>
    %c0_51 = arith.constant 0 : index
    %c0_52 = arith.constant 0 : index
    %c0_53 = arith.constant 0 : index
    %93 = vector.load %arg13[%c0_51, %c0_52, %c0_53] : memref<1x8x4xf32, #tpu.memory_space<vmem>>, vector<1x8x4xf32>
    %94 = vector.shape_cast %93 : vector<1x8x4xf32> to vector<8x4xf32>
    %95 = vector.shape_cast %92 : vector<8x4xf32> to vector<1x8x4xf32>
    tpu.vector_store %arg13[%c0_51, %c0_52, %c0_53], %95 {strides = array<i32>} : memref<1x8x4xf32, #tpu.memory_space<vmem>>, vector<1x8x4xf32>,
    %c8 = arith.constant 8 : index
    %c0_54 = arith.constant 0 : index
    %96 = vector.load %arg14[%c8, %c0_54] : memref<12x2xf32, #tpu.memory_space<vmem>>, vector<4x2xf32>
    %c0_55 = arith.constant 0 : index
    %c0_56 = arith.constant 0 : index
    %97 = vector.load %arg14[%c0_55, %c0_56] : memref<12x2xf32, #tpu.memory_space<vmem>>, vector<4x2xf32>
    tpu.vector_store %arg14[%c0_55, %c0_56], %96 {strides = array<i32>} : memref<12x2xf32, #tpu.memory_space<vmem>>, vector<4x2xf32>,
    return
  }
  func.func @transform_0(%arg0: i32, %arg1: i32) -> (i32, i32, i32) {
    %c0_i32 = arith.constant 0 : i32
    %c0_i32_0 = arith.constant 0 : i32
    return %arg0, %arg1, %c0_i32 : i32, i32, i32
  }
  func.func @transform_1(%arg0: i32, %arg1: i32) -> (i32, i32) {
    %c0_i32 = arith.constant 0 : i32
    %c0_i32_0 = arith.constant 0 : i32
    %c0_i32_1 = arith.constant 0 : i32
    return %c0_i32, %c0_i32_0 : i32, i32
  }
  func.func @transform_2(%arg0: i32, %arg1: i32) -> (i32, i32) {
    %c0_i32 = arith.constant 0 : i32
    %c0_i32_0 = arith.constant 0 : i32
    %c0_i32_1 = arith.constant 0 : i32
    return %c0_i32, %c0_i32_0 : i32, i32
  }
  func.func @transform_3(%arg0: i32, %arg1: i32) -> (i32, i32) {
    %c0_i32 = arith.constant 0 : i32
    %c0_i32_0 = arith.constant 0 : i32
    %c0_i32_1 = arith.constant 0 : i32
    return %c0_i32, %c0_i32_0 : i32, i32
  }
  func.func @transform_4(%arg0: i32, %arg1: i32) -> (i32, i32) {
    %c0_i32 = arith.constant 0 : i32
    %c0_i32_0 = arith.constant 0 : i32
    %c0_i32_1 = arith.constant 0 : i32
    return %c0_i32, %c0_i32_0 : i32, i32
  }
  func.func @transform_5(%arg0: i32, %arg1: i32) -> (i32, i32) {
    %c0_i32 = arith.constant 0 : i32
    %c0_i32_0 = arith.constant 0 : i32
    %c0_i32_1 = arith.constant 0 : i32
    return %c0_i32, %c0_i32_0 : i32, i32
  }
  func.func @transform_6(%arg0: i32, %arg1: i32) -> (i32, i32) {
    %c0_i32 = arith.constant 0 : i32
    %c0_i32_0 = arith.constant 0 : i32
    %c0_i32_1 = arith.constant 0 : i32
    return %c0_i32, %c0_i32_0 : i32, i32
  }
  func.func @transform_7(%arg0: i32, %arg1: i32) -> (i32, i32) {
    %c0_i32 = arith.constant 0 : i32
    %c0_i32_0 = arith.constant 0 : i32
    %c0_i32_1 = arith.constant 0 : i32
    return %c0_i32, %c0_i32_0 : i32, i32
  }
  func.func @transform_8(%arg0: i32, %arg1: i32) -> (i32, i32) {
    %c0_i32 = arith.constant 0 : i32
    %c0_i32_0 = arith.constant 0 : i32
    %c0_i32_1 = arith.constant 0 : i32
    return %c0_i32, %c0_i32_0 : i32, i32
  }
  func.func @transform_9(%arg0: i32, %arg1: i32) -> (i32, i32) {
    %c0_i32 = arith.constant 0 : i32
    %c0_i32_0 = arith.constant 0 : i32
    %c0_i32_1 = arith.constant 0 : i32
    return %c0_i32, %c0_i32_0 : i32, i32
  }
  func.func @transform_10(%arg0: i32, %arg1: i32) -> (i32, i32) {
    %c0_i32 = arith.constant 0 : i32
    %c0_i32_0 = arith.constant 0 : i32
    %c0_i32_1 = arith.constant 0 : i32
    return %c0_i32, %c0_i32_0 : i32, i32
  }
  func.func @transform_11(%arg0: i32, %arg1: i32) -> (i32, i32, i32) {
    %c0_i32 = arith.constant 0 : i32
    %c0_i32_0 = arith.constant 0 : i32
    return %arg0, %arg1, %c0_i32 : i32, i32, i32
  }
}

</mosaic_0001>

<bundles_post_ra>
// kernel: dilated_resblock.1
= control target key start
LH: loop header
LB: loop body
LE: loop exit
PB: predicated region body
PF: predicated region fallthrough
CT: control target
= control target key end

     0   :  { %s1213_s17 = smov 0   ;;  %s1215_s18 = smov 0   ;;  %s1344_s0 = inlined_call_operand.vmem [shape: f32[2,16,4], index: 0, kind: input, shape index: {}, may-alias: {0,11}]   ;;  %s1345_s1 = inlined_call_operand.vmem [shape: f32[4,2], index: 1, kind: input, shape index: {}]   ;;  %s1346_s2 = inlined_call_operand.vmem [shape: f32[1,2], index: 2, kind: input, shape index: {}]   ;;  %s1347_s3 = inlined_call_operand.vmem [shape: f32[6,2], index: 3, kind: input, shape index: {}]   ;;  %s1348_s4 = inlined_call_operand.vmem [shape: f32[1,2], index: 4, kind: input, shape index: {}]   ;;  %s1349_s5 = inlined_call_operand.vmem [shape: f32[2,4], index: 5, kind: input, shape index: {}]   ;;  %s1350_s6 = inlined_call_operand.vmem [shape: f32[1,4], index: 6, kind: input, shape index: {}]   ;;  %s1351_s7 = inlined_call_operand.vmem [shape: f32[1,2], index: 7, kind: input, shape index: {}]   ;;  %s1352_s8 = inlined_call_operand.vmem [shape: f32[1,2], index: 8, kind: input, shape index: {}]   ;;  %s1353_s9 = inlined_call_operand.vmem [shape: f32[1,2], index: 9, kind: input, shape index: {}]   ;;  %s1354_s10 = inlined_call_operand.vmem [shape: f32[1,2], index: 10, kind: input, shape index: {}]   ;;  %s1355_s11 = inlined_call_operand.vmem [shape: f32[2,16,4], index: 11, kind: output, shape index: {}, may-alias: {0,11}]  }
   0x1   :  { %s1217_s19 = smov 0   ;;  %s1219_s20 = smov 0  }
   0x2   :  { %s1221_s21 = smov 0  }
   0x3 LB: > { %s30_s22 = sadd.s32 1, %s1140_s19  ;;  %s33_s23 = sadd.s32 1, %s1144_s20  ;;  %s1148_s21 = sphi %s1221_s21, %s21_s21   ;;  %s1144_s20 = sphi %s1219_s20, %s1359_s20   ;;  %s1140_s19 = sphi %s1217_s19, %s1358_s19   ;;  %s1136_s18 = sphi %s1215_s18, %s1357_s18   ;;  %s1132_s17 = sphi %s1213_s17, %s1356_s17  }
   0x4   : > { %p31_p0 = scmp.ge.s32.totalorder %s30_s22, 2  ;;  %p1003_p1 = scmp.ge.s32.totalorder %s1148_s21, 1 }
   0x5   : > { %p356_p2 = scmp.lt.s32.totalorder %s1148_s21, 5 }
   0x6   : > { %s1361_s22 = smov (%p31_p0, %s30_s22), 0  ;;  %s1363_s23 = smov (!%p31_p0, %s33_s23), %s1144_s20 }
   0x7   : > { %p357_p3 = pnand %p1003_p1, %p356_p2  ;;  %p35_p4 = scmp.ge.s32.totalorder %s1363_s23, 2 }
   0x8   : > { %v422_v0 = vld [vmem:[%s1345_s1] sm:$0xf] (!%p357_p3)  ;;  %vm434_vm0 = vcmask (!%p357_p3), 1043456   ;;  %p402_p5 = scmp.lt.s32.totalorder (!%p357_p3), %s1136_s18, 1  ;;  %v1150_v1 = vmov (!%p357_p3), 0.0   ;;  %vm1151_vm1 = vmmov (!%p357_p3), 0  }
   0x9   : > { %s1365_s23 = smov (%p35_p4, %s1363_s23), 0  ;;  %360 = sbr.rel (%p357_p3) target bundleno = 1317 (0x525), region = 64 }
   0xa   : > { %1038 = vmatprep.subr.mxu0 (!%p357_p3), %v1150_v1  ;;  %1040 = vmatprep.mubr.msk.f32.mxu0 (!%p357_p3), %vm1151_vm1, %v1150_v1  ;;  %p404_p6 = scmp.lt.s32.totalorder (!%p357_p3), %s1132_s17, 1  ;;  %vm430_vm3 = vcmask (!%p357_p3), 31744   ;;  %v1008_v5 = vld [vmem:[%s1346_s2] ss:$0 sm:$0xff] (!%p357_p3)  ;;  %vm510_vm4 = vcmask (!%p357_p3), 15360   ;;  %p1013_p7 = scmp.ne.s32.totalorder (!%p357_p3), %s1132_s17, 0 }
   0xb   : > { %1039 = vmatpush3.msk.msra.mxu0 (!%p357_p3), %vm434_vm0, %v422_v0  ;;  %v1011_v19 = vld [vmem:[%s1351_s7] ss:$0 sm:$0xff] (!%p357_p3) }
   0xc   : > { %v1012_v21 = vld [vmem:[%s1352_s8] ss:$0 sm:$0xff] (!%p357_p3) }
  0x10   : > { %s1367_s18 = smov (!%p402_p5, %s1136_s18), 1  ;;  %vm546_vm6 = vcmask (!%p1013_p7), 11264   ;;  %v1152_v26 = vmov (!%p1013_p7), 0.0  }
  0x11   : > { %s405_s26 = scalar_select %p404_p6, %s1132_s17, 1 }
  0x12   : > { %s1004_s27 = sshll.u32 %s1367_s18, 1  ;;  %547 = vst.msk [vmem:[#allocation2] sm:$0xf] (!%p1013_p7), %vm546_vm6, %v1152_v26 }
  0x13   : > { %s407_s28 = sadd.s32 %s1004_s27, %s405_s26 }
  0x14   : > { %s1005_s29 = sshll.u32 %s407_s28, 3 }
  0x15   : > { %s409_s13 = scalar_lea.vmem %s1344_s0, %s1005_s29  ;;  %s1259_s16 = scalar_lea.vmem %s1355_s11, %s1005_s29 }
  0x16   : > { %v1261_v2 = vld [vmem:[%s409_s13] sm:$0xff] }
  0x17   : > { %vm419_vm2 = vcmp.ge.f32.partialorder %v1261_v2, 0.0  ;;  %v420_v3 = vmul.f32 0.01, %v1261_v2 }
  0x19   : > { %v421_v4 = vsel %vm419_vm2, %v1261_v2, %v420_v3 }
  0x1a   : > { %1041 = vmatmul.mubr.msk.f32.vlgmr.msra.gmra.mrb[0].mxu0 %vm430_vm3, %v421_v4 }
  0xed   : > { %v504_v6 = vpop.f32.mrb[0].mxu0 }
  0xee   : > { %v505_v7 = vadd.f32 %v1008_v5, %v504_v6  ;;  %v1042_v8 = vpop.f32.mrb[1].mxu0 }
  0xf0   : > { %v511_v9 = vsel %vm510_vm4, %v505_v7, 0.0 }
  0xf1   : > { %512 = vadd.xlane.f32.xlu0 %v511_v9 }
 0x17e   : > { %v513_v10 = vpop.xlane.xlu0 %512 }
 0x17f   : > { %v515_v11 = vmul.f32 0.5, %v513_v10 }
 0x181   : > { %v516_v12 = vsub.f32 %v505_v7, %v515_v11 }
 0x183   : > { %v517_v13 = vmul.f32 %v516_v12, %v516_v12 }
 0x185   : > { %v518_v14 = vsel %vm510_vm4, %v517_v13, 0.0 }
 0x186   : > { %519 = vadd.xlane.f32.xlu0 %v518_v14 }
 0x213   : > { %v520_v15 = vpop.xlane.xlu0 %519 }
 0x214   : > { %v521_v16 = vmul.f32 0.5, %v520_v15 }
 0x216   : > { %v522_v17 = vadd.f32 1e-05, %v521_v16 }
 0x218   : > { %1106 = vrsqrt.f32 %v522_v17 }
 0x222   : > { %v1107_v18 = vpop.eup %1106 }
 0x223   : > { %v524_v20 = vmul.f32 %v1107_v18, %v516_v12 }
 0x225   : > { %v531_v22 = vmul.f32 %v1011_v19, %v524_v20  ;;  %545 = sbr.rel (%p1013_p7) target bundleno = 556 (0x22c), region = 68 }
 0x227   : > { %v538_v23 = vadd.f32 %v1012_v21, %v531_v22 }
 0x229   : > { %vm539_vm5 = vcmp.ge.f32.partialorder %v538_v23, 0.0  ;;  %v540_v24 = vmul.f32 0.01, %v538_v23 }
 0x22b   : > { %v541_v25 = vsel %vm539_vm5, %v538_v23, %v540_v24 }
 0x22c PF: > { %1043 = vmatprep.subr.mxu1 %v1150_v1  ;;  %v552_v27 = vld [vmem:[%s1347_s3 + $0x2] sm:$0x3]  ;;  %vm556_vm7 = vcmask 1041408   ;;  %1048 = vmatprep.subr.mxu0 %v1150_v1  ;;  %v550_v28 = vld [vmem:[%s1347_s3] sm:$0x3]  ;;  %548 = vst.msk [vmem:[#allocation2 + $0x4] sm:$0xff] %vm510_vm4, %v541_v25 }
 0x22d   : > { %1044 = vmatpush3.msk.msra.mxu1 %vm556_vm7, %v552_v27  ;;  %1045 = vmatprep.mubr.msk.f32.mxu1 %vm1151_vm1, %v1150_v1  ;;  %vm911_vm8 = vcmask 11264   ;;  %v706_v29 = vld [vmem:[%s1347_s3 + $0x4] sm:$0x3]  ;;  %v1020_v39 = vld [vmem:[%s1348_s4] ss:$0 sm:$0xff] }
 0x22e   : > { %1049 = vmatpush3.msk.msra.mxu0 %vm556_vm7, %v550_v28  ;;  %1050 = vmatprep.mubr.msk.f32.mxu0 %vm1151_vm1, %v1150_v1  ;;  %v824_v49 = vld [vmem:[%s1349_s5] sm:$0x3] }
 0x22f   : > { %1053 = vmatprep.subr.mxu1 %v1150_v1  ;;  %1058 = vmatprep.subr.mxu0 %v1150_v1  ;;  %v1021_v54 = vld [vmem:[%s1353_s9] ss:$0 sm:$0xff] }
 0x230   : > { %v1022_v56 = vld [vmem:[%s1354_s10] ss:$0 sm:$0xff] }
 0x231   : > { %v1023_v61 = vld [vmem:[%s1350_s6] ss:$0 sm:$0xff] }
 0x233   : > { %v551_v30 = vld [vmem:[#allocation2 + $0x2] sm:$0xff] }
 0x234   : > { %v549_v31 = vld [vmem:[#allocation2] sm:$0xff]  ;;  %v910_v32 = vld [vmem:[#allocation2 + $0x8] sm:$0xf]  ;;  %1046 = vmatmul.mubr.msk.f32.vlgmr.msra.gmra.mrb[0].mxu1 %vm510_vm4, %v551_v30 }
 0x235   : > { %1051 = vmatmul.mubr.msk.f32.vlgmr.msra.gmra.mrb[2].mxu0 %vm510_vm4, %v549_v31  ;;  %912 = vst.msk [vmem:[#allocation2] sm:$0xf] %vm911_vm8, %v910_v32  ;;  %1054 = vmatpush3.msk.msra.mxu1 %vm556_vm7, %v706_v29 }
 0x236   : > { %1055 = vmatprep.mubr.msk.f32.mxu1 %vm1151_vm1, %v1150_v1  ;;  %1060 = vmatprep.mubr.msk.f32.mxu0 %vm1151_vm1, %v1150_v1 }
 0x237   : > { %1059 = vmatpush3.msk.msra.mxu0 %vm556_vm7, %v824_v49 }
 0x238   : > { %1056 = vmatmul.mubr.msk.f32.vlgmr.msra.gmra.mrb[2].mxu1 %vm510_vm4, %v541_v25 }
 0x307   : > { %v626_v33 = vpop.f32.mrb[0].mxu1 }
 0x308   : > { %v702_v34 = vpop.f32.mrb[2].mxu0  ;;  %v1047_v36 = vpop.f32.mrb[1].mxu1 }
 0x309   : > { %v703_v35 = vadd.f32 %v702_v34, %v626_v33  ;;  %v1052_v37 = vpop.f32.mrb[3].mxu0 }
 0x30b   : > { %v779_v38 = vpop.f32.mrb[2].mxu1 }
 0x30c   : > { %v783_v40 = vadd.f32 %v779_v38, %v703_v35  ;;  %v1057_v41 = vpop.f32.mrb[3].mxu1 }
 0x30e   : > { %v791_v42 = vadd.f32 %v1020_v39, %v783_v40 }
 0x310   : > { %v794_v43 = vsel %vm510_vm4, %v791_v42, 0.0 }
 0x311   : > { %795 = vadd.xlane.f32.xlu0 %v794_v43 }
 0x39e   : > { %v796_v44 = vpop.xlane.xlu0 %795 }
 0x39f   : > { %v797_v45 = vmul.f32 0.5, %v796_v44 }
 0x3a1   : > { %v798_v46 = vsub.f32 %v791_v42, %v797_v45 }
 0x3a3   : > { %v799_v47 = vmul.f32 %v798_v46, %v798_v46 }
 0x3a5   : > { %v800_v48 = vsel %vm510_vm4, %v799_v47, 0.0 }
 0x3a6   : > { %801 = vadd.xlane.f32.xlu0 %v800_v48 }
 0x433   : > { %v802_v50 = vpop.xlane.xlu0 %801 }
 0x434   : > { %v803_v51 = vmul.f32 0.5, %v802_v50 }
 0x436   : > { %v804_v52 = vadd.f32 1e-05, %v803_v51 }
 0x438   : > { %1108 = vrsqrt.f32 %v804_v52 }
 0x442   : > { %v1109_v53 = vpop.eup %1108 }
 0x443   : > { %v806_v55 = vmul.f32 %v1109_v53, %v798_v46 }
 0x445   : > { %v813_v57 = vmul.f32 %v1021_v54, %v806_v55 }
 0x447   : > { %v820_v58 = vadd.f32 %v1022_v56, %v813_v57 }
 0x449   : > { %vm821_vm9 = vcmp.ge.f32.partialorder %v820_v58, 0.0  ;;  %v822_v59 = vmul.f32 0.01, %v820_v58 }
 0x44b   : > { %v823_v60 = vsel %vm821_vm9, %v820_v58, %v822_v59 }
 0x44c   : > { %1061 = vmatmul.mubr.msk.f32.vlgmr.msra.gmra.mrb[4].mxu0 %vm510_vm4, %v823_v60 }
 0x51f   : > { %v904_v62 = vpop.f32.mrb[4].mxu0 }
 0x520   : > { %v905_v63 = vadd.f32 %v1023_v61, %v904_v62  ;;  %v1062_v0 = vpop.f32.mrb[5].mxu0 }
 0x522   : > { %v908_v1 = vadd.f32 %v905_v63, %v1261_v2 }
 0x524   : > { %909 = vst.msk [vmem:[%s1259_s16] sm:$0xff] %vm430_vm3, %v908_v1 }
 0x525 PF: > { %s21_s21 = sadd.s32 1, %s1148_s21   ;;  %s1356_s17 = smov %s1140_s19 }
 0x526   : > { %p18_p8 = scmp.ge.s32.totalorder %s21_s21, 6   ;;  %s1357_s18 = smov %s1144_s20 }
 0x527   : > { %s1358_s19 = smov %s1361_s22  ;;  %s1359_s20 = smov %s1365_s23 }
 0x528   :  { %20 = sbr.rel (!%p18_p8) target bundleno = 3 (0x3), region = 98 }

</bundles_post_ra>
